<compile_context>
chip_gen: v5e
topology: v5e:2x2
jax: 0.10.0
libtpu: 0.0.40
codegen_flags: <defaults>
</compile_context>

<pallas_src>
import jax
import jax.numpy as jnp
from jax import lax
from jax.experimental import pallas as pl
from jax.experimental.pallas import tpu as pltpu


def _round_up(x, m):
    return ((x + m - 1) // m) * m


def _cdiv(a, b):
    return (a + b - 1) // b


def _balanced_tile(dim, max_tile, align):
    """Split `dim` into near-equal chunks of size <= max_tile, aligned to `align`.

    Returns (tile, padded_dim) with padded_dim = n_chunks * tile >= dim, so
    padding waste is bounded by ~align per chunk instead of a full max_tile.
    """
    dim_a = _round_up(max(int(dim), 1), align)
    n_chunks = max(1, _cdiv(dim_a, max_tile))
    tile = _round_up(_cdiv(dim_a, n_chunks), align)
    return tile, n_chunks * tile


def _matmul_kernel_acc_out(x_ref, w_ref, o_ref):
    # f32 output: accumulate directly into the output tile (block index of the
    # output is independent of k, so it stays VMEM-resident across the K loop).
    @pl.when(pl.program_id(2) == 0)
    def _init():
        o_ref[...] = jnp.zeros_like(o_ref)

    # x_ref: (tm, tk); w_ref: (tn, tk)  -> contract on dim 1 of both (x @ w.T).
    o_ref[...] += lax.dot_general(
        x_ref[...], w_ref[...],
        dimension_numbers=(((1,), (1,)), ((), ())),
        preferred_element_type=jnp.float32,
    )


def _matmul_kernel_acc_scratch(x_ref, w_ref, o_ref, acc_ref):
    # Non-f32 output: keep an f32 VMEM accumulator, cast on the last K step.
    @pl.when(pl.program_id(2) == 0)
    def _init():
        acc_ref[...] = jnp.zeros_like(acc_ref)

    acc_ref[...] += lax.dot_general(
        x_ref[...], w_ref[...],
        dimension_numbers=(((1,), (1,)), ((), ())),
        preferred_element_type=jnp.float32,
    )

    @pl.when(pl.program_id(2) == pl.num_programs(2) - 1)
    def _store():
        o_ref[...] = acc_ref[...].astype(o_ref.dtype)


def matmul_x_wT(x2d, w):
    """y[M, N] = x2d[M, K] @ w[N, K]^T via a tiled Pallas matmul kernel.

    The weight is consumed in its native [N, K] layout (no wrapper transpose).
    """
    M, K = x2d.shape
    N, K2 = w.shape
    assert K == K2, "contraction dims must match"

    x_itemsize = jnp.dtype(x2d.dtype).itemsize
    w_itemsize = jnp.dtype(w.dtype).itemsize
    out_dtype = jnp.result_type(x2d.dtype, w.dtype)
    out_itemsize = jnp.dtype(out_dtype).itemsize

    # Sublane alignment for the M axis depends on dtype packing
    # (f32 -> 8, bf16 -> 16, int8/fp8 -> 32); use the tighter of in/out dtypes.
    m_align = max(8, 32 // min(x_itemsize, out_itemsize))

    # Tile caps: big enough for good HBM reuse, small enough that the
    # double-buffered working set stays far below v7x's 64 MiB physical VMEM.
    small_m = M <= 64  # decode / GEMV-like shapes
    tm_cap = 512
    tn_cap = 512 if small_m else 1024
    # Tiny-M shapes are weight-stream bound: collapse the K reduction into as
    # few grid steps as possible to kill per-step overhead.
    tk_cap = 2048 if small_m else 1024

    tm, M_p = _balanced_tile(M, tm_cap, m_align)
    tn, N_p = _balanced_tile(N, tn_cap, 128)
    tk, K_p = _balanced_tile(K, tk_cap, 128)

    # Zero-pad only when needed: extra K contributes nothing to the sum; extra
    # M rows / N cols are sliced off below.
    if (M_p, K_p) != (M, K):
        x2d = jnp.pad(x2d, ((0, M_p - M), (0, K_p - K)))
    if (N_p, K_p) != (N, K):
        w = jnp.pad(w, ((0, N_p - N), (0, K_p - K)))

    grid = (M_p // tm, N_p // tn, K_p // tk)

    use_out_acc = jnp.dtype(out_dtype) == jnp.dtype(jnp.float32)
    if use_out_acc:
        kernel = _matmul_kernel_acc_out
        scratch_shapes = []
        acc_bytes = 0
    else:
        kernel = _matmul_kernel_acc_scratch
        scratch_shapes = [pltpu.VMEM((tm, tn), jnp.float32)]
        acc_bytes = tm * tn * 4

    # VMEM budget: double-buffered input/output tiles + accumulator, plus
    # headroom; capped at 48 MiB so it is always safe on v7x (64 MiB physical).
    working_set = (2 * (tm * tk * x_itemsize + tn * tk * w_itemsize
                        + tm * tn * out_itemsize) + acc_bytes)
    vmem_limit = min(max(working_set + (8 << 20), 32 << 20), 48 << 20)

    # Advisory cost estimate including the HBM re-read factors.
    cost = pl.CostEstimate(
        flops=2 * M_p * N_p * K_p,
        transcendentals=0,
        bytes_accessed=(M_p * K_p * (N_p // tn) * x_itemsize
                        + N_p * K_p * (M_p // tm) * w_itemsize
                        + M_p * N_p * out_itemsize),
    )

    out_p = pl.pallas_call(
        kernel,
        out_shape=jax.ShapeDtypeStruct((M_p, N_p), out_dtype),
        grid_spec=pltpu.PrefetchScalarGridSpec(
            num_scalar_prefetch=0,
            grid=grid,
            in_specs=[
                pl.BlockSpec((tm, tk), lambda i, j, k: (i, k)),  # x tile
                pl.BlockSpec((tn, tk), lambda i, j, k: (j, k)),  # W tile ([N,K])
            ],
            out_specs=pl.BlockSpec((tm, tn), lambda i, j, k: (i, j)),
            scratch_shapes=scratch_shapes,
        ),
        compiler_params=pltpu.CompilerParams(
            dimension_semantics=("parallel", "parallel", "arbitrary"),
            vmem_limit_bytes=int(vmem_limit),
        ),
        cost_estimate=cost,
    )(x2d, w)

    return out_p[:M, :N]


def newlayer_forward(x, weight, indices=None):
    """Pallas equivalent of Newlayer.forward.

    x:       [B, S, H]
    weight:  [out_features, H]
    indices: optional 1-D int array of selected output-neuron rows, only used
             when S == 1 (decode phase), exactly as in the PyTorch module.
    """
    B, S, H = x.shape
    if S > 1:
        w = weight                              # prefill: full weight
    elif indices is not None:
        w = jnp.take(weight, indices, axis=0)   # decode: filtered weight rows
    else:
        w = weight
    x2d = x.reshape(B * S, H)
    y2d = matmul_x_wT(x2d, w)
    return y2d.reshape(B, S, w.shape[0])


if __name__ == "__main__":
    key = jax.random.PRNGKey(0)
    k_w, k_x1, k_x2 = jax.random.split(key, 3)

    batch, seq, hidden, out_features = 2, 8, 32, 64
    weight = jax.random.normal(k_w, (out_features, hidden), dtype=jnp.float32)

    # --- prefill path: seq > 1, full weight ---
    x_prefill = jax.random.normal(k_x1, (batch, seq, hidden), dtype=jnp.float32)
    y_prefill = newlayer_forward(x_prefill, weight)
    jax.block_until_ready(y_prefill)
    ref_prefill = jnp.einsum("bsh,oh->bso", x_prefill, weight)
    assert y_prefill.shape == (batch, seq, out_features)
    assert jnp.allclose(y_prefill, ref_prefill, atol=1e-4, rtol=1e-4)

    # --- decode path: seq == 1, filtered weight via indices ---
    x_decode = jax.random.normal(k_x2, (batch, 1, hidden), dtype=jnp.float32)
    indices = jnp.arange(0, out_features, 4, dtype=jnp.int32)  # 16 selected rows
    y_decode = newlayer_forward(x_decode, weight, indices=indices)
    jax.block_until_ready(y_decode)
    ref_decode = jnp.einsum("bsh,oh->bso", x_decode, weight[indices, :])
    assert y_decode.shape == (batch, 1, indices.shape[0])
    assert jnp.allclose(y_decode, ref_decode, atol=1e-4, rtol=1e-4)

    print("KERNEL_OK")
</pallas_src>

<mosaic_0001>
module attributes {stable_mosaic.version = 11 : i64} {
  func.func @_matmul_kernel_acc_out(%arg0: i32, %arg1: i32, %arg2: i32, %arg3: memref<16x128xf32, #tpu.memory_space<vmem>>, %arg4: memref<128x128xf32, #tpu.memory_space<vmem>>, %arg5: memref<16x128xf32, #tpu.memory_space<vmem>>) attributes {dimension_semantics = [#tpu.dimension_semantics<parallel>, #tpu.dimension_semantics<parallel>, #tpu.dimension_semantics<arbitrary>], iteration_bounds = array<i64: 1, 1, 1>, scalar_prefetch = 0 : i64, scratch_operands = 0 : i64, tpu.core_type = #tpu.core_type<tc>, window_params = [{transform_indices = @transform_0, window_bounds = array<i64: 16, 128>}, {transform_indices = @transform_1, window_bounds = array<i64: 128, 128>}, {transform_indices = @transform_2, window_bounds = array<i64: 16, 128>}]} {
    %c0_i32 = arith.constant 0 : i32
    %0 = arith.cmpi eq, %arg2, %c0_i32 : i32
    %1 = arith.extui %0 : i1 to i32
    %c0_i32_0 = arith.constant 0 : i32
    %2 = arith.cmpi ne, %1, %c0_i32_0 : i32
    scf.if %2 {
      %cst_8 = arith.constant 0.000000e+00 : f32
      %9 = vector.broadcast %cst_8 : f32 to vector<16x128xf32>
      %c0_9 = arith.constant 0 : index
      %c0_10 = arith.constant 0 : index
      %10 = vector.load %arg5[%c0_9, %c0_10] : memref<16x128xf32, #tpu.memory_space<vmem>>, vector<16x128xf32>
      tpu.vector_store %arg5[%c0_9, %c0_10], %9 {strides = array<i32>} : memref<16x128xf32, #tpu.memory_space<vmem>>, vector<16x128xf32>,
    } else {
    }
    %c0 = arith.constant 0 : index
    %c0_1 = arith.constant 0 : index
    %3 = vector.load %arg5[%c0, %c0_1] : memref<16x128xf32, #tpu.memory_space<vmem>>, vector<16x128xf32>
    %c0_2 = arith.constant 0 : index
    %c0_3 = arith.constant 0 : index
    %4 = vector.load %arg3[%c0_2, %c0_3] : memref<16x128xf32, #tpu.memory_space<vmem>>, vector<16x128xf32>
    %c0_4 = arith.constant 0 : index
    %c0_5 = arith.constant 0 : index
    %5 = vector.load %arg4[%c0_4, %c0_5] : memref<128x128xf32, #tpu.memory_space<vmem>>, vector<128x128xf32>
    %cst = arith.constant dense<0.000000e+00> : vector<16x128xf32>
    %6 = tpu.matmul %4, %5, %cst {dimension_numbers = #tpu.dot_dimension_numbers<[1], [1], [0], [0], [0, 0, 1, 0], [], []>} : vector<16x128xf32>, vector<128x128xf32>, vector<16x128xf32> -> vector<16x128xf32>
    %7 = arith.addf %3, %6 : vector<16x128xf32>
    %c0_6 = arith.constant 0 : index
    %c0_7 = arith.constant 0 : index
    %8 = vector.load %arg5[%c0_6, %c0_7] : memref<16x128xf32, #tpu.memory_space<vmem>>, vector<16x128xf32>
    tpu.vector_store %arg5[%c0_6, %c0_7], %7 {strides = array<i32>} : memref<16x128xf32, #tpu.memory_space<vmem>>, vector<16x128xf32>,
    return
  }
  func.func @transform_0(%arg0: i32, %arg1: i32, %arg2: i32) -> (i32, i32) {
    %c0_i32 = arith.constant 0 : i32
    return %arg0, %arg2 : i32, i32
  }
  func.func @transform_1(%arg0: i32, %arg1: i32, %arg2: i32) -> (i32, i32) {
    %c0_i32 = arith.constant 0 : i32
    return %arg1, %arg2 : i32, i32
  }
  func.func @transform_2(%arg0: i32, %arg1: i32, %arg2: i32) -> (i32, i32) {
    %c0_i32 = arith.constant 0 : i32
    return %arg0, %arg1 : i32, i32
  }
}

</mosaic_0001>

<bundles_post_ra>
// kernel: tpu_custom_call.1
= control target key start
LH: loop header
LB: loop body
LE: loop exit
PB: predicated region body
PF: predicated region fallthrough
CT: control target
= control target key end

     0   :  { %7 = vsyncpa [#allocation3], 0  ;;  %s255_s0 = inlined_call_operand.hbm [shape: f32[16,128], index: 0, kind: input, shape index: {}]   ;;  %s256_s1 = inlined_call_operand.hbm [shape: f32[128,128], index: 1, kind: input, shape index: {}]   ;;  %s257_s2 = inlined_call_operand.hbm [shape: f32[16,128], index: 2, kind: output, shape index: {}]  }
   0x1   :  { %8 = vsyncpa [#allocation6], 0 }
   0x2   :  { %9 = vsyncpa [#allocation4], 0  ;;  %s14_s11 = sshll.u32 %s255_s0, 4  ;;  %s217_s12 = smov [#allocation2]   ;;  %s15_s11 = int_to_ptr.hbm [resolvable:$true] %s14_s11 }
   0x3   :  { %s16_s13 = sshll.u32 %s217_s12, 4  ;;  %s27_s16 = sshll.u32 %s256_s1, 4  ;;  %s17_s13 = int_to_ptr.vmem [resolvable:$true] %s16_s13  ;;  %s28_s16 = int_to_ptr.hbm [resolvable:$true] %s27_s16 }
   0x4   :  { %s218_s17 = smov 128   ;;  %s219_s18 = smov 8  }
   0x5   :  { %22 = dma.hbm_to_vmem [thread:$0]  %s15_s11, 256, %s17_s13, [#allocation3], %s218_s17, %s218_s17, %s219_s18  }
   0x6   :  { %s220_s19 = smov [#allocation5]  }
   0x7   :  { %s29_s20 = sshll.u32 %s220_s19, 4  ;;  %s30_s20 = int_to_ptr.vmem [resolvable:$true] %s29_s20 }
   0x8   :  { %35 = dma.hbm_to_vmem [thread:$0]  %s28_s16, 2048, %s30_s20, [#allocation6], %s218_s17, %s218_s17, %s219_s18  }
   0x9   :  { %211 = dma.done.wait [#allocation3], 256  }
   0xa   :  { %212 = vsyncadd [#allocation3], 4294967040 }
   0xb   :  { %213 = dma.done.wait [#allocation6], 2048  }
   0xc   :  { %214 = vsyncadd [#allocation6], 4294965248  ;;  %v69_v0 = vld [vmem:[#allocation5 + $0x78] sm:$0xff]  ;;  %v68_v1 = vld [vmem:[#allocation5 + $0x70] sm:$0xff]  ;;  %s221_s0 = smov [#allocation7]   ;;  %s103_s23 = sshll.u32 %s257_s2, 4  ;;  %s104_s23 = int_to_ptr.hbm [resolvable:$true] %s103_s23 }
   0xd   :  { %70 = vmatpush.xpose.msra.mxu0 %v69_v0  ;;  %117 = vmatpush.xpose.msra.mxu1 %v69_v0  ;;  %v67_v2 = vld [vmem:[#allocation5 + $0x68] sm:$0xff]  ;;  %v66_v3 = vld [vmem:[#allocation5 + $0x60] sm:$0xff]  ;;  %v65_v4 = vld [vmem:[#allocation5 + $0x58] sm:$0xff]  ;;  %s101_s1 = sshll.u32 %s221_s0, 4  ;;  %s102_s1 = int_to_ptr.vmem [resolvable:$true] %s101_s1 }
   0xe   :  { %v64_v5 = vld [vmem:[#allocation5 + $0x50] sm:$0xff]  ;;  %v63_v6 = vld [vmem:[#allocation5 + $0x48] sm:$0xff]  ;;  %v62_v7 = vld [vmem:[#allocation5 + $0x40] sm:$0xff] }
   0xf   :  { %v61_v8 = vld [vmem:[#allocation5 + $0x38] sm:$0xff]  ;;  %v60_v9 = vld [vmem:[#allocation5 + $0x30] sm:$0xff]  ;;  %v59_v10 = vld [vmem:[#allocation5 + $0x28] sm:$0xff] }
  0x10   :  { %v58_v11 = vld [vmem:[#allocation5 + $0x20] sm:$0xff]  ;;  %v57_v12 = vld [vmem:[#allocation5 + $0x18] sm:$0xff]  ;;  %v56_v13 = vld [vmem:[#allocation5 + $0x10] sm:$0xff] }
  0x11   :  { %71 = vmatpush.xpose.msra.mxu0 %v68_v1  ;;  %118 = vmatpush.xpose.msra.mxu1 %v68_v1  ;;  %v55_v14 = vld [vmem:[#allocation5 + $0x8] sm:$0xff]  ;;  %v54_v15 = vld [vmem:[#allocation5] sm:$0xff]  ;;  %v52_v16 = vld [vmem:[#allocation2] sm:$0xff] }
  0x12   :  { %v53_v17 = vld [vmem:[#allocation2 + $0x8] sm:$0xff] }
  0x15   :  { %72 = vmatpush.xpose.msra.mxu0 %v67_v2  ;;  %119 = vmatpush.xpose.msra.mxu1 %v67_v2 }
  0x19   :  { %73 = vmatpush.xpose.msra.mxu0 %v66_v3  ;;  %120 = vmatpush.xpose.msra.mxu1 %v66_v3 }
  0x1d   :  { %74 = vmatpush.xpose.msra.mxu0 %v65_v4  ;;  %121 = vmatpush.xpose.msra.mxu1 %v65_v4 }
  0x21   :  { %75 = vmatpush.xpose.msra.mxu0 %v64_v5  ;;  %122 = vmatpush.xpose.msra.mxu1 %v64_v5 }
  0x25   :  { %76 = vmatpush.xpose.msra.mxu0 %v63_v6  ;;  %123 = vmatpush.xpose.msra.mxu1 %v63_v6 }
  0x29   :  { %77 = vmatpush.xpose.msra.mxu0 %v62_v7  ;;  %124 = vmatpush.xpose.msra.mxu1 %v62_v7 }
  0x2d   :  { %78 = vmatpush.xpose.msra.mxu0 %v61_v8  ;;  %125 = vmatpush.xpose.msra.mxu1 %v61_v8 }
  0x31   :  { %79 = vmatpush.xpose.msra.mxu0 %v60_v9  ;;  %126 = vmatpush.xpose.msra.mxu1 %v60_v9 }
  0x35   :  { %80 = vmatpush.xpose.msra.mxu0 %v59_v10  ;;  %127 = vmatpush.xpose.msra.mxu1 %v59_v10 }
  0x39   :  { %81 = vmatpush.xpose.msra.mxu0 %v58_v11  ;;  %128 = vmatpush.xpose.msra.mxu1 %v58_v11 }
  0x3d   :  { %82 = vmatpush.xpose.msra.mxu0 %v57_v12  ;;  %129 = vmatpush.xpose.msra.mxu1 %v57_v12 }
  0x41   :  { %83 = vmatpush.xpose.msra.mxu0 %v56_v13  ;;  %130 = vmatpush.xpose.msra.mxu1 %v56_v13 }
  0x45   :  { %84 = vmatpush.xpose.msra.mxu0 %v55_v14  ;;  %131 = vmatpush.xpose.msra.mxu1 %v55_v14 }
  0x49   :  { %85 = vmatpush.xpose.msra.mxu0 %v54_v15  ;;  %132 = vmatpush.xpose.msra.mxu1 %v54_v15 }
  0x4c   :  { %86 = vmatmul.f32.vlgmr.msra.gmra.mxu0 %v52_v16  ;;  %89 = vmatmul.f32.vlgmr.msra.gmra.mxu1 %v53_v17 }
  0xc9   :  { %v87_v18 = vpop.f32.mrf.mxu0  ;;  %v90_v19 = vpop.f32.mrf.mxu1 }
  0xca   :  { %95 = vst [vmem:[#allocation7] sm:$0xff] %v87_v18 }
  0xcb   :  { %96 = vst [vmem:[#allocation7 + $0x8] sm:$0xff] %v90_v19 }
  0xcc   :  { %109 = dma.vmem_to_hbm [thread:$0]  %s102_s1, 256, %s104_s23, [#allocation4], %s218_s17, %s218_s17, %s219_s18  }
  0xcd   :  { %215 = dma.done.wait [#allocation4], 256  }
  0xce   :  { %216 = vsyncadd [#allocation4], 4294967040 }
  0xcf   :  { %114 = vsyncpa [#allocation3], 1 }
  0xd0   :  { %115 = vsyncpa [#allocation6], 1 }
  0xd1   :  { %116 = vsyncpa [#allocation4], 1 }

</bundles_post_ra>
